<compile_context>
chip_gen: v7x
topology: tpu7x:2x2x1
jax: 0.10.0
libtpu: 0.0.40
codegen_flags: <defaults>
</compile_context>

<pallas_src>
import functools

import jax
import jax.numpy as jnp
from jax import lax
from jax.experimental import pallas as pl
from jax.experimental.pallas import tpu as pltpu

LANE = 128
SUB_ROWS = 256        # rows per in-kernel accumulation sub-chunk
MAX_BLOCK_ROWS = 4096 # (4096, 128) f32 tile = 2 MiB per input, double-buffered


def _cdiv(a, b):
    return -(-a // b)


def _sublane_multiple(dtype):
    itemsize = jnp.dtype(dtype).itemsize
    return {4: 8, 2: 16, 1: 32}.get(itemsize, 8)


def _tloss_partial_kernel(inv_nu_ref, x_ref, y_ref, out_ref, *,
                          rows_total, block_rows, sub_rows):
    """Accumulates per-vreg partial sums of log1p((x - y)^2 * inv_nu).

    grid = (outer parallel chunks, inner reduction steps).  The (8, LANE)
    output block is resident across the inner ("arbitrary") axis and acts as
    a vector accumulator; the scalar reduction happens once, in the wrapper.
    Rows at/after `rows_total` (partial edge block or clamped phantom block)
    are masked to zero before log1p.
    """
    j = pl.program_id(1)

    @pl.when(j == 0)
    def _():
        out_ref[...] = jnp.zeros_like(out_ref)

    inv_nu = inv_nu_ref[0]
    # Logical block id (phantom blocks keep their logical id even though the
    # index_map clamps their DMA onto the last valid block).
    b = pl.program_id(0) * pl.num_programs(1) + j
    block_row0 = b * block_rows
    nsub = block_rows // sub_rows

    def body(c, acc):
        r0 = pl.multiple_of(c * sub_rows, sub_rows)
        xs = x_ref[pl.ds(r0, sub_rows), :].astype(jnp.float32)
        ys = y_ref[pl.ds(r0, sub_rows), :].astype(jnp.float32)
        row_ids = (block_row0 + r0
                   + lax.broadcasted_iota(jnp.int32, (sub_rows, LANE), 0))
        d = jnp.where(row_ids < rows_total, xs - ys, 0.0)
        t = jnp.log1p((d * d) * inv_nu)            # log1p(0) == 0 for masked rows
        # Reduce sub_rows -> 8 with pure vreg-wise adds (VALU), keep (8, LANE).
        return acc + t.reshape(-1, 8, LANE).sum(axis=0)

    acc = lax.fori_loop(0, nsub, body, jnp.zeros((8, LANE), jnp.float32))
    out_ref[...] += acc


def _choose_tiling(rows_total, smul):
    """Returns (block_rows, num_outer, num_inner, num_blocks) or None."""
    if rows_total < smul:
        return None
    # Force a 2-way outer split (v7x megacore) whenever at least two sublane
    # groups of rows exist; harmless serial loop on single-TC v5e/v6e.
    target_outer = 2 if rows_total >= 2 * smul else 1
    block_rows = max(smul, ((rows_total // target_outer) // smul) * smul)
    block_rows = min(MAX_BLOCK_ROWS, block_rows)
    if block_rows > SUB_ROWS:
        # Keep block_rows a multiple of the in-kernel sub-chunk size.
        block_rows = (block_rows // SUB_ROWS) * SUB_ROWS
    num_blocks = _cdiv(rows_total, block_rows)
    num_outer = target_outer if num_blocks >= target_outer else 1
    num_inner = _cdiv(num_blocks, num_outer)
    return block_rows, num_outer, num_inner, num_blocks


def _log1p_frac_partial_sums(x2d, y2d, inv_nu_arr, rows_total, block_rows,
                             num_outer, num_inner, num_blocks):
    sub_rows = min(SUB_ROWS, block_rows)
    kernel = functools.partial(
        _tloss_partial_kernel,
        rows_total=rows_total, block_rows=block_rows, sub_rows=sub_rows)

    itemsize = jnp.dtype(x2d.dtype).itemsize
    n_cov = rows_total * LANE
    cost = pl.CostEstimate(
        flops=5 * n_cov,
        transcendentals=n_cov,
        bytes_accessed=2 * n_cov * itemsize + num_outer * 8 * LANE * 4,
    )

    last_block = num_blocks - 1

    def in_map(i, j):
        # Clamp phantom blocks (logical id >= num_blocks) onto the last valid
        # block so the DMA stays in bounds; their contribution is masked away.
        return (jnp.minimum(i * num_inner + j, last_block), 0)

    return pl.pallas_call(
        kernel,
        out_shape=jax.ShapeDtypeStruct((num_outer * 8, LANE), jnp.float32),
        grid=(num_outer, num_inner),
        in_specs=[
            pl.BlockSpec(memory_space=pltpu.MemorySpace.SMEM),  # inv_nu (1,)
            pl.BlockSpec((block_rows, LANE), in_map),
            pl.BlockSpec((block_rows, LANE), in_map),
        ],
        out_specs=pl.BlockSpec((8, LANE), lambda i, j: (i, 0)),
        compiler_params=pltpu.CompilerParams(
            dimension_semantics=("parallel", "arbitrary"),
            vmem_limit_bytes=32 * 1024 * 1024),
        cost_estimate=cost,
    )(inv_nu_arr, x2d, y2d)


@functools.partial(jax.jit, static_argnames=("dim", "epsilon", "reduce"))
def t_loss(inputs, target, nu_tilde, *, dim, epsilon=1e-8, reduce="mean"):
    if reduce not in ("mean", "sum"):
        raise ValueError(f"The reduction {reduce} is not implemented")

    x = inputs.reshape(-1)
    y = target.reshape(-1)
    n = x.shape[0]

    nu = jnp.exp(jnp.asarray(nu_tilde, jnp.float32)) + jnp.float32(epsilon)
    inv_nu = jnp.float32(1.0) / nu

    rows_total = n // LANE
    n_lane = rows_total * LANE
    smul = _sublane_multiple(x.dtype)
    tiling = _choose_tiling(rows_total, smul) if rows_total > 0 else None

    sum_log = jnp.float32(0.0)
    if tiling is not None:
        block_rows, num_outer, num_inner, num_blocks = tiling
        x2d = x[:n_lane].reshape(rows_total, LANE)
        y2d = y[:n_lane].reshape(rows_total, LANE)
        partials = _log1p_frac_partial_sums(
            x2d, y2d, inv_nu.reshape(1), rows_total, block_rows,
            num_outer, num_inner, num_blocks)
        sum_log = sum_log + jnp.sum(partials)
        tail_start = n_lane
    else:
        tail_start = 0

    if tail_start < n:
        # Sub-128-element remainder (or tiny inputs) in plain JAX.
        xt = x[tail_start:].astype(jnp.float32)
        yt = y[tail_start:].astype(jnp.float32)
        dt = xt - yt
        sum_log = sum_log + jnp.sum(jnp.log1p(dt * dt * inv_nu))

    # Scalar (per-element constant) glue terms.
    first = -lax.lgamma((nu + dim) / 2.0)
    second = lax.lgamma(nu / 2.0)
    third = (dim / 2.0) * jnp.log(jnp.pi * nu)
    const = first + second + third

    total = const * n + (nu + dim) / 2.0 * sum_log
    return total / n if reduce == "mean" else total


def _t_loss_ref(inputs, target, nu_tilde, dim, epsilon=1e-8, reduce="mean"):
    inputs = inputs.astype(jnp.float32)
    target = target.astype(jnp.float32)
    delta = inputs - target
    nu = jnp.exp(jnp.asarray(nu_tilde, jnp.float32)) + epsilon
    first = -lax.lgamma((nu + dim) / 2.0)
    second = lax.lgamma(nu / 2.0)
    third = dim / 2.0 * jnp.log(jnp.pi * nu)
    fourth = (nu + dim) / 2.0 * jnp.log1p(delta * delta / nu)
    loss = first + second + third + fourth
    return jnp.mean(loss) if reduce == "mean" else jnp.sum(loss)


if __name__ == "__main__":
    key = jax.random.PRNGKey(0)
    k1, k2, k3, k4 = jax.random.split(key, 4)

    dim = 4                         # T_Loss(dim=...) constructor argument
    nu_tilde = jnp.float32(1.0)     # deterministic init: torch.tensor(1.0)

    # Case 1: f32 image-like input (2, 4, 16, 16) -> exact tile coverage.
    B, C, H, W = 2, 4, 16, 16
    x = jax.random.normal(k1, (B, C, H, W), dtype=jnp.float32)
    y = jax.random.normal(k2, (B, C, H, W), dtype=jnp.float32)
    out = jax.block_until_ready(t_loss(x, y, nu_tilde, dim=dim, reduce="mean"))
    ref = _t_loss_ref(x, y, nu_tilde, dim, reduce="mean")
    assert jnp.allclose(out, ref, rtol=1e-4, atol=1e-4), (out, ref)

    # Case 2: ragged flat size -> exercises masked partial block, clamped
    # phantom block (odd block count with 2-way outer split) and the <128
    # element JAX tail, with sum reduction.
    n2 = 40 * 128 + 37
    x2 = jax.random.normal(k3, (n2,), dtype=jnp.float32)
    y2 = jax.random.normal(k4, (n2,), dtype=jnp.float32)
    out2 = jax.block_until_ready(t_loss(x2, y2, nu_tilde, dim=dim, reduce="sum"))
    ref2 = _t_loss_ref(x2, y2, nu_tilde, dim, reduce="sum")
    assert jnp.allclose(out2, ref2, rtol=1e-4, atol=1e-3), (out2, ref2)

    # Case 3: bf16 inputs streamed un-upcast through the DMA (halved HBM
    # traffic); kernel upcasts on the VPU; (16,128) min-tile respected.
    xb = x.astype(jnp.bfloat16)
    yb = y.astype(jnp.bfloat16)
    out3 = jax.block_until_ready(t_loss(xb, yb, nu_tilde, dim=dim, reduce="mean"))
    ref3 = _t_loss_ref(xb, yb, nu_tilde, dim, reduce="mean")
    assert jnp.allclose(out3, ref3, rtol=2e-3, atol=2e-3), (out3, ref3)

    print("KERNEL_OK")
</pallas_src>

<mosaic_0001>
module attributes {stable_mosaic.version = 11 : i64} {
  func.func @_tloss_partial_kernel(%arg0: i32, %arg1: i32, %arg2: memref<1xf32, #tpu.memory_space<smem>>, %arg3: memref<8x128xf32, #tpu.memory_space<vmem>>, %arg4: memref<8x128xf32, #tpu.memory_space<vmem>>, %arg5: memref<8x128xf32, #tpu.memory_space<vmem>>) attributes {dimension_semantics = [#tpu.dimension_semantics<parallel>, #tpu.dimension_semantics<arbitrary>], iteration_bounds = array<i64: 2, 1>, scalar_prefetch = 0 : i64, scratch_operands = 0 : i64, tpu.core_type = #tpu.core_type<tc>, window_params = [{transform_indices = @transform_0, window_bounds = array<i64: 1>}, {transform_indices = @transform_1, window_bounds = array<i64: 8, 128>}, {transform_indices = @transform_2, window_bounds = array<i64: 8, 128>}, {transform_indices = @transform_3, window_bounds = array<i64: 8, 128>}]} {
    %c0_i32 = arith.constant 0 : i32
    %0 = arith.cmpi eq, %arg1, %c0_i32 : i32
    %1 = arith.extui %0 : i1 to i32
    %c0_i32_0 = arith.constant 0 : i32
    %2 = arith.cmpi ne, %1, %c0_i32_0 : i32
    scf.if %2 {
      %cst_12 = arith.constant 0.000000e+00 : f32
      %33 = vector.broadcast %cst_12 : f32 to vector<8x128xf32>
      %c0_13 = arith.constant 0 : index
      %c0_14 = arith.constant 0 : index
      %34 = vector.load %arg5[%c0_13, %c0_14] : memref<8x128xf32, #tpu.memory_space<vmem>>, vector<8x128xf32>
      tpu.vector_store %arg5[%c0_13, %c0_14], %33 {strides = array<i32>} : memref<8x128xf32, #tpu.memory_space<vmem>>, vector<8x128xf32>,
    } else {
    }
    %c0 = arith.constant 0 : index
    %3 = memref.load %arg2[%c0] : memref<1xf32, #tpu.memory_space<smem>>
    %c1_i32 = arith.constant 1 : i32
    %4 = arith.muli %arg0, %c1_i32 : i32
    %5 = arith.addi %4, %arg1 : i32
    %c8_i32 = arith.constant 8 : i32
    %6 = arith.muli %5, %c8_i32 : i32
    %cst = arith.constant 0.000000e+00 : f32
    %7 = vector.broadcast %cst : f32 to vector<8x128xf32>
    %c0_i32_1 = arith.constant 0 : i32
    %c8_i32_2 = arith.constant 8 : i32
    %8 = arith.muli %c0_i32_1, %c8_i32_2 : i32
    %9 = tpu.assume_multiple %8, 8 : i32
    %10 = arith.index_cast %9 : i32 to index
    %c0_3 = arith.constant 0 : index
    %11 = vector.load %arg3[%10, %c0_3] : memref<8x128xf32, #tpu.memory_space<vmem>>, vector<8x128xf32>
    %12 = arith.index_cast %9 : i32 to index
    %c0_4 = arith.constant 0 : index
    %13 = vector.load %arg4[%12, %c0_4] : memref<8x128xf32, #tpu.memory_space<vmem>>, vector<8x128xf32>
    %14 = arith.addi %6, %9 : i32
    %15 = tpu.iota {dimensions = array<i32: 0>} : vector<8x128xi32>
    %16 = vector.broadcast %14 : i32 to vector<8x128xi32>
    %17 = arith.addi %16, %15 : vector<8x128xi32>
    %c16_i32 = arith.constant 16 : i32
    %18 = vector.broadcast %c16_i32 : i32 to vector<8x128xi32>
    %19 = arith.cmpi slt, %17, %18 : vector<8x128xi32>
    %20 = arith.subf %11, %13 : vector<8x128xf32>
    %cst_5 = arith.constant 0.000000e+00 : f32
    %21 = vector.broadcast %cst_5 : f32 to vector<8x128xf32>
    %22 = arith.select %19, %20, %21 : vector<8x128xi1>, vector<8x128xf32>
    %23 = arith.mulf %22, %22 : vector<8x128xf32>
    %24 = vector.broadcast %3 : f32 to vector<8x128xf32>
    %25 = arith.mulf %23, %24 : vector<8x128xf32>
    %26 = math.log1p %25 : vector<8x128xf32>
    %27 = vector.shape_cast %26 : vector<8x128xf32> to vector<1x8x128xf32>
    %cst_6 = arith.constant dense<0.000000e+00> : vector<8x128xf32>
    %28 = vector.multi_reduction <add>, %27, %cst_6 [0] : vector<1x8x128xf32> to vector<8x128xf32>
    %29 = arith.addf %7, %28 : vector<8x128xf32>
    %c1_i32_7 = arith.constant 1 : i32
    %c0_8 = arith.constant 0 : index
    %c0_9 = arith.constant 0 : index
    %30 = vector.load %arg5[%c0_8, %c0_9] : memref<8x128xf32, #tpu.memory_space<vmem>>, vector<8x128xf32>
    %31 = arith.addf %30, %29 : vector<8x128xf32>
    %c0_10 = arith.constant 0 : index
    %c0_11 = arith.constant 0 : index
    %32 = vector.load %arg5[%c0_10, %c0_11] : memref<8x128xf32, #tpu.memory_space<vmem>>, vector<8x128xf32>
    tpu.vector_store %arg5[%c0_10, %c0_11], %31 {strides = array<i32>} : memref<8x128xf32, #tpu.memory_space<vmem>>, vector<8x128xf32>,
    return
  }
  func.func @transform_0(%arg0: i32, %arg1: i32) -> i32 {
    %c0_i32 = arith.constant 0 : i32
    %c0_i32_0 = arith.constant 0 : i32
    return %c0_i32 : i32
  }
  func.func @transform_1(%arg0: i32, %arg1: i32) -> (i32, i32) {
    %c1_i32 = arith.constant 1 : i32
    %0 = arith.muli %arg0, %c1_i32 : i32
    %1 = arith.addi %0, %arg1 : i32
    %c1_i32_0 = arith.constant 1 : i32
    %2 = arith.minsi %1, %c1_i32_0 : i32
    %c0_i32 = arith.constant 0 : i32
    %c0_i32_1 = arith.constant 0 : i32
    return %2, %c0_i32 : i32, i32
  }
  func.func @transform_2(%arg0: i32, %arg1: i32) -> (i32, i32) {
    %c1_i32 = arith.constant 1 : i32
    %0 = arith.muli %arg0, %c1_i32 : i32
    %1 = arith.addi %0, %arg1 : i32
    %c1_i32_0 = arith.constant 1 : i32
    %2 = arith.minsi %1, %c1_i32_0 : i32
    %c0_i32 = arith.constant 0 : i32
    %c0_i32_1 = arith.constant 0 : i32
    return %2, %c0_i32 : i32, i32
  }
  func.func @transform_3(%arg0: i32, %arg1: i32) -> (i32, i32) {
    %c0_i32 = arith.constant 0 : i32
    %c0_i32_0 = arith.constant 0 : i32
    return %arg0, %c0_i32 : i32, i32
  }
}

</mosaic_0001>

<bundles_post_ra>
// kernel: t_loss.1
= control target key start
LH: loop header
LB: loop body
LE: loop exit
PB: predicated region body
PF: predicated region fallthrough
CT: control target
= control target key end

     0   :  { %s437_s14 = smov 0   ;;  %s439_s15 = smov 0   ;;  %s473_s0 = inlined_call_operand.<no memory space> [shape: f32[1], index: 0, kind: input, shape index: {}]   ;;  %s474_s1 = inlined_call_operand.vmem [shape: f32[16,128], index: 1, kind: input, shape index: {}]   ;;  %s475_s2 = inlined_call_operand.vmem [shape: f32[16,128], index: 2, kind: input, shape index: {}]   ;;  %s476_s3 = inlined_call_operand.vmem [shape: f32[16,128], index: 3, kind: output, shape index: {}]  }
   0x1   :  { %8 = sst [smem:[#allocation2]] %s473_s0  ;;  %s441_s16 = smov 0  }
   0x2 LB: > { %s26_s0 = sadd.s32 1, %s408_s15  ;;  %p350_p0 = scmp.ge.s32.totalorder %s412_s16, 1  ;;  %s412_s16 = sphi %s441_s16, %s14_s16   ;;  %s408_s15 = sphi %s439_s15, %s478_s15   ;;  %s404_s14 = sphi %s437_s14, %s477_s14  }
   0x3   : > { %p28_p1 = scmp.ge.s32.totalorder %s26_s0, 2  ;;  %p182_p2 = scmp.lt.s32.totalorder %s412_s16, 3 }
   0x5   : > { %s480_s0 = smov (%p28_p1, %s26_s0), 0  ;;  %p183_p3 = pnand %p350_p0, %p182_p2 }
   0x6   : > { %p215_p4 = scmp.lt.s32.totalorder (!%p183_p3), %s404_s14, 1  ;;  %v249_v0 = vlaneseq (!%p183_p3)  ;;  %s360_s17 = sshll.u32 (!%p183_p3), %s404_s14, 3 }
   0x7   : > { %186 = sbr.rel (%p183_p3) target bundleno = 45 (0x2d), region = 32  ;;  %v251_v2 = vstv (!%p183_p3), %s360_s17  ;;  %s243_s18 = sld [smem:[#allocation2]] (!%p183_p3) }
   0x8   : > { %v250_v1 = vshrl.u32 (!%p183_p3), %v249_v0, 7 }
   0xa   : > { %v252_v3 = vadd.s32 (!%p183_p3), %v251_v2, %v250_v1 }
   0xc   : > { %vm253_vm0 = vcmp.lt.s32.totalorder (!%p183_p3), %v252_v3, 16 }
   0xd   : > { %v257_v8 = vstv (!%p183_p3), %s243_s18 }
   0xe   : > { %s482_s14 = smov (!%p215_p4, %s404_s14), 1 }
   0xf   : > { %s218_s19 = scalar_select %p215_p4, %s482_s14, 1 }
  0x10   : > { %s359_s27 = sshll.u32 %s482_s14, 3 }
  0x11   : > { %s354_s20 = sshll.u32 %s218_s19, 3  ;;  %s237_s30 = scalar_lea.vmem %s476_s3, %s359_s27 }
  0x12   : > { %s220_s23 = scalar_lea.vmem %s474_s1, %s354_s20  ;;  %s230_s26 = scalar_lea.vmem %s475_s2, %s354_s20 }
  0x13   : > { %v246_v4 = vld [vmem:[%s220_s23] sm:$0xff] }
  0x14   : > { %v247_v5 = vld [vmem:[%s230_s26] sm:$0xff] }
  0x15   : > { %v254_v6 = vsub.f32 %v246_v4, %v247_v5 }
  0x17   : > { %v255_v7 = vsel %vm253_vm0, %v254_v6, 0.0 }
  0x18   : > { %v256_v9 = vmul.f32 %v255_v7, %v255_v7 }
  0x1a   : > { %v258_v10 = vmul.f32 %v257_v8, %v256_v9 }
  0x1c   : > { %v259_v11 = vadd.f32 1.0, %v258_v10  ;;  %v262_v12 = vmul.f32 -0.5, %v258_v10  ;;  %v265_v14 = vand.u32 2147483647, %v258_v10 }
  0x1e   : > { %388 = vlog2.f32 %v259_v11  ;;  %v263_v13 = vadd.f32 1.0, %v262_v12  ;;  %vm266_vm1 = vcmp.lt.f32.partialorder %v265_v14, 0.0004427343 }
  0x20   : > { %v264_v15 = vmul.f32 %v263_v13, %v258_v10 }
  0x28   : > { %v389_v16 = vpop.eup %388 }
  0x29   : > { %v261_v17 = vmul.f32 0.6931472, %v389_v16 }
  0x2b   : > { %v267_v18 = vsel %vm266_vm1, %v264_v15, %v261_v17 }
  0x2c   : > { %272 = vst [vmem:[%s237_s30] sm:$0xff] %v267_v18 }
  0x2d PF: > { %s14_s16 = sadd.s32 1, %s412_s16   ;;  %s477_s14 = smov %s408_s15 }
  0x2e   : > { %p11_p5 = scmp.ge.s32.totalorder %s14_s16, 4   ;;  %s478_s15 = smov %s480_s0 }
  0x30   :  { %13 = sbr.rel (!%p11_p5) target bundleno = 2 (0x2), region = 69 }

</bundles_post_ra>
